<compile_context>
chip_gen: v7x
topology: tpu7x:2x2x1
jax: 0.10.0
libtpu: 0.0.40
codegen_flags: <defaults>
</compile_context>

<pallas_src>
import functools

import jax
import jax.numpy as jnp
from jax.experimental import pallas as pl
from jax.experimental.pallas import tpu as pltpu


def _round_up(x, m):
    return (x + m - 1) // m * m


# -----------------------------------------------------------------------------
# Kernel: one fused chain of dense matmuls per batch tile.
# -----------------------------------------------------------------------------
def nbeats_generic_kernel(
    x_ref,      # [TB, CLb_p]          bf16  VMEM
    w0_ref,     # [CLb_p, CU_p]        bf16  VMEM (block-diagonal, zero-padded)
    b0_ref,     # [1, CU_p]            f32   VMEM
    wh_ref,     # [NH, CU_p, CU_p]     bf16  VMEM (block-diagonal per layer)
    bh_ref,     # [NH, 1, CU_p]        f32   VMEM
    wth_ref,    # [CU_p, C2Th_p]       bf16  VMEM (block-diagonal, wtb||wtf fused)
    wout_ref,   # [C2Th_p, OUT_p]      bf16  VMEM (agg + back/fore fc folded in)
    bout_ref,   # [1, OUT_p]           f32   VMEM (agg bias + back/fore bias folded in)
    out_ref,    # [TB, OUT_p]          f32   out VMEM
    *,
    num_hidden_layers: int,
):
    cdt = w0_ref.dtype  # MXU input dtype (bf16); accumulation is always f32.

    # First FC layer of every channel, one block-diagonal matmul.
    h = jnp.maximum(
        jnp.dot(x_ref[...], w0_ref[...], preferred_element_type=jnp.float32)
        + b0_ref[...],
        0.0)

    # Remaining (num_block_layers - 1) FC layers.
    for l in range(num_hidden_layers):
        # TODO(synk): nn.Dropout is identity in eval mode; training-mode dropout not implemented.
        h = jnp.maximum(
            jnp.dot(h.astype(cdt), wh_ref[l], preferred_element_type=jnp.float32)
            + bh_ref[l],
            0.0)

    # Fused theta_b || theta_f projection (no bias) + ReLU.
    theta = jnp.maximum(
        jnp.dot(h.astype(cdt), wth_ref[...], preferred_element_type=jnp.float32),
        0.0)

    # Combined (channel-agg + backcast_fc + forecast_fc) projection: one lane-dense store.
    out_ref[...] = (
        jnp.dot(theta.astype(cdt), wout_ref[...], preferred_element_type=jnp.float32)
        + bout_ref[...]).astype(out_ref.dtype)


# -----------------------------------------------------------------------------
# Parameters (PyTorch-equivalent, stored (in_dim, out_dim)) and host-side packing.
# -----------------------------------------------------------------------------
def make_params(key, *, units, thetas_dim, num_block_layers, backcast_length,
                forecast_length, tar_num, cov_num):
    """Deterministic synthetic parameters in (in_dim, out_dim) convention."""
    C = tar_num + cov_num
    NH = num_block_layers - 1
    ks = jax.random.split(key, 12)
    scale = 0.1
    return dict(
        w0=jax.random.normal(ks[0], (C, backcast_length, units), jnp.float32) * scale,
        b0=jax.random.normal(ks[1], (C, 1, units), jnp.float32) * scale,
        wh=jax.random.normal(ks[2], (C, NH, units, units), jnp.float32) * scale,
        bh=jax.random.normal(ks[3], (C, NH, 1, units), jnp.float32) * scale,
        wtb=jax.random.normal(ks[4], (C, units, thetas_dim), jnp.float32) * scale,
        wtf=jax.random.normal(ks[5], (C, units, thetas_dim), jnp.float32) * scale,
        aggw=jax.random.normal(ks[6], (tar_num, C), jnp.float32) * scale,
        aggb=jax.random.normal(ks[7], (tar_num,), jnp.float32) * scale,
        bw=jax.random.normal(ks[8], (tar_num, thetas_dim, backcast_length), jnp.float32) * scale,
        bb=jax.random.normal(ks[9], (tar_num, 1, backcast_length), jnp.float32) * scale,
        fw=jax.random.normal(ks[10], (tar_num, thetas_dim, forecast_length), jnp.float32) * scale,
        fb=jax.random.normal(ks[11], (tar_num, 1, forecast_length), jnp.float32) * scale,
    )


def _pad_to(a, shape):
    """Zero-pad array `a` up to `shape` (trailing padding only)."""
    pads = [(0, t - s) for s, t in zip(a.shape, shape)]
    if all(p == (0, 0) for p in pads):
        return a
    return jnp.pad(a, pads)


def pack_params(p, *, units, thetas_dim, num_block_layers, backcast_length,
                forecast_length, tar_num, cov_num, compute_dtype=jnp.bfloat16):
    """Host-side packing: block-diagonal per-channel weights, fused theta weights,
    the channel-agg / backcast / forecast projections folded into one matrix, and
    every packed feature dim zero-padded to a multiple of 128 lanes."""
    C = tar_num + cov_num
    U, Th, Lb, Lf, T = units, thetas_dim, backcast_length, forecast_length, tar_num
    NH = num_block_layers - 1

    CLb, CU, C2Th, OUT = C * Lb, C * U, C * 2 * Th, T * (Lb + Lf)
    CLb_p = _round_up(CLb, 128)
    CU_p = _round_up(CU, 128)
    C2Th_p = _round_up(C2Th, 128)
    OUT_p = _round_up(OUT, 128)

    def block_diag(ws):  # [C, din, dout] -> [C*din, C*dout]
        Cc, din, dout = ws.shape
        eye = jnp.eye(Cc, dtype=ws.dtype)
        return jnp.einsum("cd,cab->cadb", eye, ws).reshape(Cc * din, Cc * dout)

    w0_blk = block_diag(p["w0"])                      # [C*Lb, C*U]
    b0_blk = p["b0"].reshape(1, CU)                   # [1, C*U]

    if NH > 0:
        wh_blk = jnp.stack([block_diag(p["wh"][:, l]) for l in range(NH)])  # [NH, C*U, C*U]
        bh_blk = p["bh"].transpose(1, 0, 2, 3).reshape(NH, 1, CU)           # [NH, 1, C*U]
    else:  # dummy (never read: num_hidden_layers == 0 skips the loop)
        wh_blk = jnp.zeros((1, CU, CU), jnp.float32)
        bh_blk = jnp.zeros((1, 1, CU), jnp.float32)
    NHpad = wh_blk.shape[0]

    # Fuse theta_b and theta_f along the output dim, then block-diagonalize.
    wth_blk = block_diag(jnp.concatenate([p["wtb"], p["wtf"]], axis=2))      # [C*U, C*2Th]

    # Combined output projection: folds agg_layer (Linear(C->1), weight+bias) and the
    # per-target backcast_fc / forecast_fc (weights+biases) into one [C*2Th, T*(Lb+Lf)]
    # matmul + one [1, T*(Lb+Lf)] bias. Column layout: [T*Lb backcasts | T*Lf forecasts].
    wb = jnp.einsum("ic,ikj->ckij", p["aggw"], p["bw"])     # [C, Th, T, Lb]
    wf = jnp.einsum("ic,ikj->ckij", p["aggw"], p["fw"])     # [C, Th, T, Lf]
    wout_back = jnp.concatenate([wb, jnp.zeros_like(wb)], axis=1).reshape(C2Th, T * Lb)
    wout_fore = jnp.concatenate([jnp.zeros_like(wf), wf], axis=1).reshape(C2Th, T * Lf)
    wout = jnp.concatenate([wout_back, wout_fore], axis=1)  # [C*2Th, T*(Lb+Lf)]

    bout_back = (p["aggb"][:, None] * p["bw"].sum(axis=1) + p["bb"][:, 0, :]).reshape(1, T * Lb)
    bout_fore = (p["aggb"][:, None] * p["fw"].sum(axis=1) + p["fb"][:, 0, :]).reshape(1, T * Lf)
    bout = jnp.concatenate([bout_back, bout_fore], axis=1)  # [1, T*(Lb+Lf)]

    # Zero-pad every feature dim to a multiple of 128 lanes (exact: padded columns stay
    # zero through bias + ReLU; padded rows contribute nothing to the next matmul).
    w0_blk = _pad_to(w0_blk, (CLb_p, CU_p))
    b0_blk = _pad_to(b0_blk, (1, CU_p))
    wh_blk = _pad_to(wh_blk, (NHpad, CU_p, CU_p))
    bh_blk = _pad_to(bh_blk, (NHpad, 1, CU_p))
    wth_blk = _pad_to(wth_blk, (CU_p, C2Th_p))
    wout = _pad_to(wout, (C2Th_p, OUT_p))
    bout = _pad_to(bout, (1, OUT_p))

    return dict(
        w0=w0_blk.astype(compute_dtype),
        b0=b0_blk.astype(jnp.float32),
        wh=wh_blk.astype(compute_dtype),
        bh=bh_blk.astype(jnp.float32),
        wth=wth_blk.astype(compute_dtype),
        wout=wout.astype(compute_dtype),
        bout=bout.astype(jnp.float32),
        num_hidden_layers=NH,
        dims=dict(CLb=CLb, CLb_p=CLb_p, CU_p=CU_p, C2Th_p=C2Th_p, OUT=OUT, OUT_p=OUT_p),
    )


# -----------------------------------------------------------------------------
# Wrapper
# -----------------------------------------------------------------------------
def nbeats_generic_block(x, packed, *, thetas_dim, backcast_length, forecast_length,
                         tar_num, cov_num, batch_tile=512):
    """x: [B, Lb, C] -> (backcast [B, Lb, tar_num], forecast [B, Lf, tar_num])."""
    B, Lb, C = x.shape
    assert C == tar_num + cov_num and Lb == backcast_length
    Lf, T = forecast_length, tar_num
    NH = packed["num_hidden_layers"]
    d = packed["dims"]
    CLb, CLb_p, CU_p, C2Th_p = d["CLb"], d["CLb_p"], d["CU_p"], d["C2Th_p"]
    OUT, OUT_p = d["OUT"], d["OUT_p"]
    NHpad = packed["wh"].shape[0]

    # Channel-major packing of x: [B, C*Lb] (lane-contiguous per channel block),
    # then zero-pad the feature dim to the lane-aligned width used by the weights.
    x_packed = jnp.transpose(x, (0, 2, 1)).reshape(B, CLb).astype(packed["w0"].dtype)
    if CLb_p != CLb:
        x_packed = jnp.pad(x_packed, ((0, 0), (0, CLb_p - CLb)))

    # Batch tile: multiple of 8 sublanes; pad B so the grid divides evenly.
    TB = min(batch_tile, _round_up(B, 8))
    B_pad = _round_up(B, TB)
    if B_pad != B:
        x_packed = jnp.pad(x_packed, ((0, B_pad - B), (0, 0)))

    kernel = functools.partial(nbeats_generic_kernel, num_hidden_layers=NH)

    grid_spec = pltpu.PrefetchScalarGridSpec(
        num_scalar_prefetch=0,
        grid=(B_pad // TB,),
        in_specs=[
            pl.BlockSpec((TB, CLb_p), lambda b: (b, 0)),            # x tile (pipelined)
            pl.BlockSpec((CLb_p, CU_p), lambda b: (0, 0)),          # weights: constant block
            pl.BlockSpec((1, CU_p), lambda b: (0, 0)),              #  -> stay VMEM-resident
            pl.BlockSpec((NHpad, CU_p, CU_p), lambda b: (0, 0, 0)),
            pl.BlockSpec((NHpad, 1, CU_p), lambda b: (0, 0, 0)),
            pl.BlockSpec((CU_p, C2Th_p), lambda b: (0, 0)),
            pl.BlockSpec((C2Th_p, OUT_p), lambda b: (0, 0)),
            pl.BlockSpec((1, OUT_p), lambda b: (0, 0)),
        ],
        out_specs=pl.BlockSpec((TB, OUT_p), lambda b: (b, 0)),
    )

    out = pl.pallas_call(
        kernel,
        out_shape=jax.ShapeDtypeStruct((B_pad, OUT_p), jnp.float32),
        grid_spec=grid_spec,
        compiler_params=pltpu.CompilerParams(
            dimension_semantics=("parallel",),        # batch tiles -> 2 TCs on v7x
            vmem_limit_bytes=48 * 1024 * 1024,        # fits v7x (64 MiB) and v5e/v6e
        ),
    )(x_packed, packed["w0"], packed["b0"], packed["wh"], packed["bh"],
      packed["wth"], packed["wout"], packed["bout"])

    out = out[:B, :OUT]
    backcast = out[:, :T * Lb].reshape(B, T, Lb).transpose(0, 2, 1)   # [B, Lb, T]
    forecast = out[:, T * Lb:].reshape(B, T, Lf).transpose(0, 2, 1)   # [B, Lf, T]
    return backcast, forecast


# -----------------------------------------------------------------------------
# Pure-JAX float32 reference mirroring the PyTorch forward (eval mode).
# -----------------------------------------------------------------------------
def nbeats_generic_block_ref(x, p, *, num_block_layers, tar_num, cov_num):
    C = tar_num + cov_num
    NH = num_block_layers - 1
    theta_bs, theta_fs = [], []
    for n in range(C):
        h = jnp.maximum(x[..., n] @ p["w0"][n] + p["b0"][n], 0.0)
        for l in range(NH):
            h = jnp.maximum(h @ p["wh"][n, l] + p["bh"][n, l], 0.0)
        theta_bs.append(jnp.maximum(h @ p["wtb"][n], 0.0))
        theta_fs.append(jnp.maximum(h @ p["wtf"][n], 0.0))
    theta_bs = jnp.stack(theta_bs, axis=2)   # [B, Th, C]
    theta_fs = jnp.stack(theta_fs, axis=2)   # [B, Th, C]
    backs, fores = [], []
    for i in range(tar_num):
        tb = jnp.einsum("btc,c->bt", theta_bs, p["aggw"][i]) + p["aggb"][i]
        tf = jnp.einsum("btc,c->bt", theta_fs, p["aggw"][i]) + p["aggb"][i]
        backs.append(tb @ p["bw"][i] + p["bb"][i])
        fores.append(tf @ p["fw"][i] + p["fb"][i])
    return jnp.stack(backs, axis=2), jnp.stack(fores, axis=2)


if __name__ == "__main__":
    # Small, forward-consistent shapes.
    B = 8
    units = 32
    thetas_dim = 8
    backcast_length = 16
    forecast_length = 8
    num_block_layers = 4
    tar_num, cov_num = 1, 1
    C = tar_num + cov_num

    key = jax.random.PRNGKey(0)
    k_x, k_p = jax.random.split(key)
    x = jax.random.normal(k_x, (B, backcast_length, C), jnp.float32)
    params = make_params(
        k_p, units=units, thetas_dim=thetas_dim, num_block_layers=num_block_layers,
        backcast_length=backcast_length, forecast_length=forecast_length,
        tar_num=tar_num, cov_num=cov_num)
    packed = pack_params(
        params, units=units, thetas_dim=thetas_dim, num_block_layers=num_block_layers,
        backcast_length=backcast_length, forecast_length=forecast_length,
        tar_num=tar_num, cov_num=cov_num, compute_dtype=jnp.bfloat16)

    backcast, forecast = nbeats_generic_block(
        x, packed, thetas_dim=thetas_dim, backcast_length=backcast_length,
        forecast_length=forecast_length, tar_num=tar_num, cov_num=cov_num)
    jax.block_until_ready((backcast, forecast))

    back_ref, fore_ref = nbeats_generic_block_ref(
        x, params, num_block_layers=num_block_layers, tar_num=tar_num, cov_num=cov_num)

    assert backcast.shape == (B, backcast_length, tar_num)
    assert forecast.shape == (B, forecast_length, tar_num)
    # bf16 MXU inputs with f32 accumulation -> loosened tolerance vs the f32 reference.
    assert jnp.allclose(backcast, back_ref, atol=2e-2, rtol=2e-2)
    assert jnp.allclose(forecast, fore_ref, atol=2e-2, rtol=2e-2)

    print("KERNEL_OK")
</pallas_src>

<mosaic_0001>
module attributes {stable_mosaic.version = 11 : i64} {
  func.func @nbeats_generic_kernel(%arg0: i32, %arg1: memref<8x128xbf16, #tpu.memory_space<vmem>>, %arg2: memref<128x128xbf16, #tpu.memory_space<vmem>>, %arg3: memref<1x128xf32, #tpu.memory_space<vmem>>, %arg4: memref<3x128x128xbf16, #tpu.memory_space<vmem>>, %arg5: memref<3x1x128xf32, #tpu.memory_space<vmem>>, %arg6: memref<128x128xbf16, #tpu.memory_space<vmem>>, %arg7: memref<128x128xbf16, #tpu.memory_space<vmem>>, %arg8: memref<1x128xf32, #tpu.memory_space<vmem>>, %arg9: memref<8x128xf32, #tpu.memory_space<vmem>>) attributes {dimension_semantics = [#tpu.dimension_semantics<parallel>], iteration_bounds = array<i64: 1>, scalar_prefetch = 0 : i64, scratch_operands = 0 : i64, tpu.core_type = #tpu.core_type<tc>, window_params = [{transform_indices = @transform_0, window_bounds = array<i64: 8, 128>}, {pipeline_mode = #tpu.pipeline_mode<synchronous>, transform_indices = @transform_1, window_bounds = array<i64: 128, 128>}, {pipeline_mode = #tpu.pipeline_mode<synchronous>, transform_indices = @transform_2, window_bounds = array<i64: 1, 128>}, {pipeline_mode = #tpu.pipeline_mode<synchronous>, transform_indices = @transform_3, window_bounds = array<i64: 3, 128, 128>}, {pipeline_mode = #tpu.pipeline_mode<synchronous>, transform_indices = @transform_4, window_bounds = array<i64: 3, 1, 128>}, {pipeline_mode = #tpu.pipeline_mode<synchronous>, transform_indices = @transform_5, window_bounds = array<i64: 128, 128>}, {pipeline_mode = #tpu.pipeline_mode<synchronous>, transform_indices = @transform_6, window_bounds = array<i64: 128, 128>}, {pipeline_mode = #tpu.pipeline_mode<synchronous>, transform_indices = @transform_7, window_bounds = array<i64: 1, 128>}, {transform_indices = @transform_8, window_bounds = array<i64: 8, 128>}]} {
    %c0 = arith.constant 0 : index
    %c0_0 = arith.constant 0 : index
    %0 = vector.load %arg1[%c0, %c0_0] : memref<8x128xbf16, #tpu.memory_space<vmem>>, vector<8x128xbf16>
    %c0_1 = arith.constant 0 : index
    %c0_2 = arith.constant 0 : index
    %1 = vector.load %arg2[%c0_1, %c0_2] : memref<128x128xbf16, #tpu.memory_space<vmem>>, vector<128x128xbf16>
    %cst = arith.constant dense<0.000000e+00> : vector<8x128xf32>
    %2 = tpu.matmul %0, %1, %cst {dimension_numbers = #tpu.dot_dimension_numbers<[1], [0], [0], [1], [0, 0, 1, 1], [], []>} : vector<8x128xbf16>, vector<128x128xbf16>, vector<8x128xf32> -> vector<8x128xf32>
    %c0_3 = arith.constant 0 : index
    %c0_4 = arith.constant 0 : index
    %3 = vector.load %arg3[%c0_3, %c0_4] : memref<1x128xf32, #tpu.memory_space<vmem>>, vector<1x128xf32>
    %4 = vector.broadcast %3 : vector<1x128xf32> to vector<8x128xf32>
    %5 = arith.addf %2, %4 : vector<8x128xf32>
    %cst_5 = arith.constant 0.000000e+00 : f32
    %6 = vector.broadcast %cst_5 : f32 to vector<8x128xf32>
    %7 = arith.maximumf %5, %6 : vector<8x128xf32>
    %8 = arith.truncf %7 : vector<8x128xf32> to vector<8x128xbf16>
    %c0_6 = arith.constant 0 : index
    %c0_7 = arith.constant 0 : index
    %c0_8 = arith.constant 0 : index
    %9 = vector.load %arg4[%c0_6, %c0_7, %c0_8] : memref<3x128x128xbf16, #tpu.memory_space<vmem>>, vector<1x128x128xbf16>
    %10 = vector.shape_cast %9 : vector<1x128x128xbf16> to vector<128x128xbf16>
    %cst_9 = arith.constant dense<0.000000e+00> : vector<8x128xf32>
    %11 = tpu.matmul %8, %10, %cst_9 {dimension_numbers = #tpu.dot_dimension_numbers<[1], [0], [0], [1], [0, 0, 1, 1], [], []>} : vector<8x128xbf16>, vector<128x128xbf16>, vector<8x128xf32> -> vector<8x128xf32>
    %c0_10 = arith.constant 0 : index
    %c0_11 = arith.constant 0 : index
    %c0_12 = arith.constant 0 : index
    %12 = vector.load %arg5[%c0_10, %c0_11, %c0_12] : memref<3x1x128xf32, #tpu.memory_space<vmem>>, vector<1x1x128xf32>
    %13 = vector.shape_cast %12 : vector<1x1x128xf32> to vector<1x128xf32>
    %14 = vector.broadcast %13 : vector<1x128xf32> to vector<8x128xf32>
    %15 = arith.addf %11, %14 : vector<8x128xf32>
    %cst_13 = arith.constant 0.000000e+00 : f32
    %16 = vector.broadcast %cst_13 : f32 to vector<8x128xf32>
    %17 = arith.maximumf %15, %16 : vector<8x128xf32>
    %18 = arith.truncf %17 : vector<8x128xf32> to vector<8x128xbf16>
    %c1 = arith.constant 1 : index
    %c0_14 = arith.constant 0 : index
    %c0_15 = arith.constant 0 : index
    %19 = vector.load %arg4[%c1, %c0_14, %c0_15] : memref<3x128x128xbf16, #tpu.memory_space<vmem>>, vector<1x128x128xbf16>
    %20 = vector.shape_cast %19 : vector<1x128x128xbf16> to vector<128x128xbf16>
    %cst_16 = arith.constant dense<0.000000e+00> : vector<8x128xf32>
    %21 = tpu.matmul %18, %20, %cst_16 {dimension_numbers = #tpu.dot_dimension_numbers<[1], [0], [0], [1], [0, 0, 1, 1], [], []>} : vector<8x128xbf16>, vector<128x128xbf16>, vector<8x128xf32> -> vector<8x128xf32>
    %c1_17 = arith.constant 1 : index
    %c0_18 = arith.constant 0 : index
    %c0_19 = arith.constant 0 : index
    %22 = vector.load %arg5[%c1_17, %c0_18, %c0_19] : memref<3x1x128xf32, #tpu.memory_space<vmem>>, vector<1x1x128xf32>
    %23 = vector.shape_cast %22 : vector<1x1x128xf32> to vector<1x128xf32>
    %24 = vector.broadcast %23 : vector<1x128xf32> to vector<8x128xf32>
    %25 = arith.addf %21, %24 : vector<8x128xf32>
    %cst_20 = arith.constant 0.000000e+00 : f32
    %26 = vector.broadcast %cst_20 : f32 to vector<8x128xf32>
    %27 = arith.maximumf %25, %26 : vector<8x128xf32>
    %28 = arith.truncf %27 : vector<8x128xf32> to vector<8x128xbf16>
    %c2 = arith.constant 2 : index
    %c0_21 = arith.constant 0 : index
    %c0_22 = arith.constant 0 : index
    %29 = vector.load %arg4[%c2, %c0_21, %c0_22] : memref<3x128x128xbf16, #tpu.memory_space<vmem>>, vector<1x128x128xbf16>
    %30 = vector.shape_cast %29 : vector<1x128x128xbf16> to vector<128x128xbf16>
    %cst_23 = arith.constant dense<0.000000e+00> : vector<8x128xf32>
    %31 = tpu.matmul %28, %30, %cst_23 {dimension_numbers = #tpu.dot_dimension_numbers<[1], [0], [0], [1], [0, 0, 1, 1], [], []>} : vector<8x128xbf16>, vector<128x128xbf16>, vector<8x128xf32> -> vector<8x128xf32>
    %c2_24 = arith.constant 2 : index
    %c0_25 = arith.constant 0 : index
    %c0_26 = arith.constant 0 : index
    %32 = vector.load %arg5[%c2_24, %c0_25, %c0_26] : memref<3x1x128xf32, #tpu.memory_space<vmem>>, vector<1x1x128xf32>
    %33 = vector.shape_cast %32 : vector<1x1x128xf32> to vector<1x128xf32>
    %34 = vector.broadcast %33 : vector<1x128xf32> to vector<8x128xf32>
    %35 = arith.addf %31, %34 : vector<8x128xf32>
    %cst_27 = arith.constant 0.000000e+00 : f32
    %36 = vector.broadcast %cst_27 : f32 to vector<8x128xf32>
    %37 = arith.maximumf %35, %36 : vector<8x128xf32>
    %38 = arith.truncf %37 : vector<8x128xf32> to vector<8x128xbf16>
    %c0_28 = arith.constant 0 : index
    %c0_29 = arith.constant 0 : index
    %39 = vector.load %arg6[%c0_28, %c0_29] : memref<128x128xbf16, #tpu.memory_space<vmem>>, vector<128x128xbf16>
    %cst_30 = arith.constant dense<0.000000e+00> : vector<8x128xf32>
    %40 = tpu.matmul %38, %39, %cst_30 {dimension_numbers = #tpu.dot_dimension_numbers<[1], [0], [0], [1], [0, 0, 1, 1], [], []>} : vector<8x128xbf16>, vector<128x128xbf16>, vector<8x128xf32> -> vector<8x128xf32>
    %cst_31 = arith.constant 0.000000e+00 : f32
    %41 = vector.broadcast %cst_31 : f32 to vector<8x128xf32>
    %42 = arith.maximumf %40, %41 : vector<8x128xf32>
    %43 = arith.truncf %42 : vector<8x128xf32> to vector<8x128xbf16>
    %c0_32 = arith.constant 0 : index
    %c0_33 = arith.constant 0 : index
    %44 = vector.load %arg7[%c0_32, %c0_33] : memref<128x128xbf16, #tpu.memory_space<vmem>>, vector<128x128xbf16>
    %cst_34 = arith.constant dense<0.000000e+00> : vector<8x128xf32>
    %45 = tpu.matmul %43, %44, %cst_34 {dimension_numbers = #tpu.dot_dimension_numbers<[1], [0], [0], [1], [0, 0, 1, 1], [], []>} : vector<8x128xbf16>, vector<128x128xbf16>, vector<8x128xf32> -> vector<8x128xf32>
    %c0_35 = arith.constant 0 : index
    %c0_36 = arith.constant 0 : index
    %46 = vector.load %arg8[%c0_35, %c0_36] : memref<1x128xf32, #tpu.memory_space<vmem>>, vector<1x128xf32>
    %47 = vector.broadcast %46 : vector<1x128xf32> to vector<8x128xf32>
    %48 = arith.addf %45, %47 : vector<8x128xf32>
    %c0_37 = arith.constant 0 : index
    %c0_38 = arith.constant 0 : index
    %49 = vector.load %arg9[%c0_37, %c0_38] : memref<8x128xf32, #tpu.memory_space<vmem>>, vector<8x128xf32>
    tpu.vector_store %arg9[%c0_37, %c0_38], %48 {strides = array<i32>} : memref<8x128xf32, #tpu.memory_space<vmem>>, vector<8x128xf32>,
    return
  }
  func.func @transform_0(%arg0: i32) -> (i32, i32) {
    %c0_i32 = arith.constant 0 : i32
    %c0_i32_0 = arith.constant 0 : i32
    return %arg0, %c0_i32 : i32, i32
  }
  func.func @transform_1(%arg0: i32) -> (i32, i32) {
    %c0_i32 = arith.constant 0 : i32
    %c0_i32_0 = arith.constant 0 : i32
    %c0_i32_1 = arith.constant 0 : i32
    return %c0_i32, %c0_i32_0 : i32, i32
  }
  func.func @transform_2(%arg0: i32) -> (i32, i32) {
    %c0_i32 = arith.constant 0 : i32
    %c0_i32_0 = arith.constant 0 : i32
    %c0_i32_1 = arith.constant 0 : i32
    return %c0_i32, %c0_i32_0 : i32, i32
  }
  func.func @transform_3(%arg0: i32) -> (i32, i32, i32) {
    %c0_i32 = arith.constant 0 : i32
    %c0_i32_0 = arith.constant 0 : i32
    %c0_i32_1 = arith.constant 0 : i32
    %c0_i32_2 = arith.constant 0 : i32
    return %c0_i32, %c0_i32_0, %c0_i32_1 : i32, i32, i32
  }
  func.func @transform_4(%arg0: i32) -> (i32, i32, i32) {
    %c0_i32 = arith.constant 0 : i32
    %c0_i32_0 = arith.constant 0 : i32
    %c0_i32_1 = arith.constant 0 : i32
    %c0_i32_2 = arith.constant 0 : i32
    return %c0_i32, %c0_i32_0, %c0_i32_1 : i32, i32, i32
  }
  func.func @transform_5(%arg0: i32) -> (i32, i32) {
    %c0_i32 = arith.constant 0 : i32
    %c0_i32_0 = arith.constant 0 : i32
    %c0_i32_1 = arith.constant 0 : i32
    return %c0_i32, %c0_i32_0 : i32, i32
  }
  func.func @transform_6(%arg0: i32) -> (i32, i32) {
    %c0_i32 = arith.constant 0 : i32
    %c0_i32_0 = arith.constant 0 : i32
    %c0_i32_1 = arith.constant 0 : i32
    return %c0_i32, %c0_i32_0 : i32, i32
  }
  func.func @transform_7(%arg0: i32) -> (i32, i32) {
    %c0_i32 = arith.constant 0 : i32
    %c0_i32_0 = arith.constant 0 : i32
    %c0_i32_1 = arith.constant 0 : i32
    return %c0_i32, %c0_i32_0 : i32, i32
  }
  func.func @transform_8(%arg0: i32) -> (i32, i32) {
    %c0_i32 = arith.constant 0 : i32
    %c0_i32_0 = arith.constant 0 : i32
    return %arg0, %c0_i32 : i32, i32
  }
}

</mosaic_0001>

<bundles_post_ra>
// kernel: tpu_custom_call.1
= control target key start
LH: loop header
LB: loop body
LE: loop exit
PB: predicated region body
PF: predicated region fallthrough
CT: control target
= control target key end

     0   :  { %13 = vsyncpa [#allocation3], 0  ;;  %s1430_s0 = inlined_call_operand.hbm [shape: bf16[8,128], index: 0, kind: input, shape index: {}]   ;;  %s1431_s1 = inlined_call_operand.hbm [shape: bf16[128,128], index: 1, kind: input, shape index: {}]   ;;  %s1432_s2 = inlined_call_operand.vmem [shape: f32[1,128], index: 2, kind: input, shape index: {}]   ;;  %s1433_s3 = inlined_call_operand.hbm [shape: bf16[3,128,128], index: 3, kind: input, shape index: {}]   ;;  %s1434_s4 = inlined_call_operand.vmem [shape: f32[3,1,128], index: 4, kind: input, shape index: {}]   ;;  %s1435_s5 = inlined_call_operand.hbm [shape: bf16[128,128], index: 5, kind: input, shape index: {}]   ;;  %s1436_s6 = inlined_call_operand.hbm [shape: bf16[128,128], index: 6, kind: input, shape index: {}]   ;;  %s1437_s7 = inlined_call_operand.vmem [shape: f32[1,128], index: 7, kind: input, shape index: {}]   ;;  %s1438_s8 = inlined_call_operand.hbm [shape: f32[8,128], index: 8, kind: output, shape index: {}]  }
   0x1   :  { %14 = vsyncpa [#allocation6], 0 }
   0x2   :  { %15 = vsyncpa [#allocation9], 0 }
   0x3   :  { %16 = vsyncpa [#allocation4], 0  ;;  %s1216_s27 = smov [#allocation5]   ;;  %s1076_s9 = scalar_lea.hbm %s1431_s1, 1024 }
   0x4   :  { %s32_s28 = sshll.u32 %s1216_s27, 4  ;;  %p1077_p0 = scmp.ne.s32.totalorder %s1431_s1, %s1076_s9  ;;  %s33_s28 = int_to_ptr.vmem [resolvable:$true] %s32_s28 }
   0x5   :  { %p1080_p1 = scmp.lt.u32.totalorder %s1076_s9, %s1431_s1 }
   0x7   :  { %p1082_p2 = pnand %p1080_p1, %p1077_p0 }
   0x9   :  { %1085 = shalt.err (!%p1082_p2)
}
   0xa   :  { %s1086_s14 = scalar_lea.vmem %s33_s28, 1024  ;;  %p1091_p4 = scmp.lt.s32.totalorder %s33_s28, %s33_s28 }
   0xb   :  { %p1087_p3 = scmp.ne.s32.totalorder %s33_s28, %s1086_s14  ;;  %p1092_p5 = scmp.lt.s32.totalorder %s1086_s14, %s1086_s14 }
   0xd   :  { %p1093_p6 = por %p1092_p5, %p1091_p4 }
   0xf   :  { %p1094_p7 = pnand %p1093_p6, %p1087_p3 }
  0x11   :  { %1097 = shalt.err (!%p1094_p7)
}
  0x12   :  { %s1217_s15 = smov 64   ;;  %s1218_s16 = smov 4  }
  0x13   :  { %38 = dma.hbm_to_vmem [thread:$0]  %s1431_s1, 1024, %s33_s28, [#allocation6], %s1217_s15, %s1217_s15, %s1218_s16  }
  0x14   :  { %s1219_s19 = smov [#allocation8]   ;;  %s1220_s21 = smov [#allocation2]  }
  0x15   :  { %s60_s20 = sshll.u32 %s1219_s19, 4  ;;  %s23_s22 = sshll.u32 %s1220_s21, 4  ;;  %s61_s20 = int_to_ptr.vmem [resolvable:$true] %s60_s20  ;;  %s24_s22 = int_to_ptr.vmem [resolvable:$true] %s23_s22 }
  0x16   :  { %s1098_s25 = scalar_lea.hbm %s1435_s5, 1024 }
  0x17   :  { %p1099_p8 = scmp.ne.s32.totalorder %s1435_s5, %s1098_s25  ;;  %p1102_p9 = scmp.lt.u32.totalorder %s1098_s25, %s1435_s5 }
  0x19   :  { %p1104_p10 = pnand %p1102_p9, %p1099_p8 }
  0x1b   :  { %1107 = shalt.err (!%p1104_p10)
}
  0x1c   :  { %s1108_s1 = scalar_lea.vmem %s61_s20, 1024  ;;  %p1113_p12 = scmp.lt.s32.totalorder %s61_s20, %s61_s20 }
  0x1d   :  { %p1109_p11 = scmp.ne.s32.totalorder %s61_s20, %s1108_s1  ;;  %p1114_p13 = scmp.lt.s32.totalorder %s1108_s1, %s1108_s1 }
  0x1f   :  { %p1115_p0 = por %p1114_p13, %p1113_p12 }
  0x21   :  { %p1116_p1 = pnand %p1115_p0, %p1109_p11 }
  0x23   :  { %1119 = shalt.err (!%p1116_p1)
}
  0x24   :  { %66 = dma.hbm_to_vmem [thread:$0]  %s1435_s5, 1024, %s61_s20, [#allocation9], %s1217_s15, %s1217_s15, %s1218_s16  }
  0x25   :  { %s1120_s12 = scalar_lea.hbm %s1430_s0, 64 }
  0x26   :  { %p1121_p2 = scmp.ne.s32.totalorder %s1430_s0, %s1120_s12  ;;  %p1124_p3 = scmp.lt.u32.totalorder %s1120_s12, %s1430_s0 }
  0x28   :  { %p1126_p4 = pnand %p1124_p3, %p1121_p2 }
  0x2a   :  { %1129 = shalt.err (!%p1126_p4)
}
  0x2b   :  { %s1130_s19 = scalar_lea.vmem %s24_s22, 64  ;;  %p1135_p6 = scmp.lt.s32.totalorder %s24_s22, %s24_s22 }
  0x2c   :  { %p1131_p5 = scmp.ne.s32.totalorder %s24_s22, %s1130_s19  ;;  %p1136_p7 = scmp.lt.s32.totalorder %s1130_s19, %s1130_s19 }
  0x2e   :  { %p1137_p8 = por %p1136_p7, %p1135_p6 }
  0x30   :  { %p1138_p9 = pnand %p1137_p8, %p1131_p5 }
  0x32   :  { %1141 = shalt.err (!%p1138_p9)
}
  0x33   :  { %26 = dma.hbm_to_vmem [thread:$0]  %s1430_s0, 64, %s24_s22, [#allocation3]  }
  0x34   :  { %s1221_s21 = smov [#allocation7]   ;;  %s1222_s24 = smov [#allocation10]  }
  0x35   :  { %s46_s23 = sshll.u32 %s1221_s21, 4  ;;  %s72_s25 = sshll.u32 %s1222_s24, 4  ;;  %s47_s23 = int_to_ptr.vmem [resolvable:$true] %s46_s23  ;;  %s73_s25 = int_to_ptr.vmem [resolvable:$true] %s72_s25 }
  0x36   :  { %s1142_s29 = scalar_lea.hbm %s1433_s3, 3072 }
  0x37   :  { %p1143_p10 = scmp.ne.s32.totalorder %s1433_s3, %s1142_s29  ;;  %p1146_p11 = scmp.lt.u32.totalorder %s1142_s29, %s1433_s3 }
  0x39   :  { %p1148_p12 = pnand %p1146_p11, %p1143_p10 }
  0x3b   :  { %1151 = shalt.err (!%p1148_p12)
}
  0x3c   :  { %s1152_s0 = scalar_lea.vmem %s47_s23, 3072  ;;  %p1157_p0 = scmp.lt.s32.totalorder %s47_s23, %s47_s23 }
  0x3d   :  { %p1153_p13 = scmp.ne.s32.totalorder %s47_s23, %s1152_s0  ;;  %p1158_p1 = scmp.lt.s32.totalorder %s1152_s0, %s1152_s0 }
  0x3f   :  { %p1159_p2 = por %p1158_p1, %p1157_p0 }
  0x41   :  { %p1160_p3 = pnand %p1159_p2, %p1153_p13 }
  0x43   :  { %1163 = shalt.err (!%p1160_p3)
}
  0x44   :  { %52 = dma.hbm_to_vmem [thread:$0]  %s1433_s3, 3072, %s47_s23, [#allocation6], %s1217_s15, %s1217_s15, %s1218_s16  }
  0x45   :  { %s1164_s13 = scalar_lea.hbm %s1436_s6, 1024 }
  0x46   :  { %p1165_p4 = scmp.ne.s32.totalorder %s1436_s6, %s1164_s13  ;;  %p1168_p5 = scmp.lt.u32.totalorder %s1164_s13, %s1436_s6 }
  0x48   :  { %p1170_p6 = pnand %p1168_p5, %p1165_p4 }
  0x4a   :  { %1173 = shalt.err (!%p1170_p6)
}
  0x4b   :  { %s1174_s5 = scalar_lea.vmem %s73_s25, 1024  ;;  %p1179_p8 = scmp.lt.s32.totalorder %s73_s25, %s73_s25 }
  0x4c   :  { %p1175_p7 = scmp.ne.s32.totalorder %s73_s25, %s1174_s5  ;;  %p1180_p9 = scmp.lt.s32.totalorder %s1174_s5, %s1174_s5 }
  0x4e   :  { %p1181_p10 = por %p1180_p9, %p1179_p8 }
  0x50   :  { %p1182_p11 = pnand %p1181_p10, %p1175_p7 }
  0x52   :  { %1185 = shalt.err (!%p1182_p11)
}
  0x53   :  { %78 = dma.hbm_to_vmem [thread:$0]  %s1436_s6, 1024, %s73_s25, [#allocation9], %s1217_s15, %s1217_s15, %s1218_s16  }
  0x54   :  { %1208 = dma.done.wait [#allocation3], 64  }
  0x55   :  { %1209 = vsyncadd [#allocation3], 4294967232 }
  0x56   :  { %1210 = dma.done.wait [#allocation6], 4096  }
  0x57   :  { %1211 = vsyncadd [#allocation6], 4294963200 }
  0x58   :  { %1212 = dma.done.wait [#allocation9], 2048  }
  0x59   :  { %1213 = vsyncadd [#allocation9], 4294965248  ;;  %v1223_v0 = vmov 0.0   ;;  %vm1224_vm0 = vmmov 0   ;;  %v1028_v1 = vld [vmem:[#allocation5] sm:$0xff]   ;;  %v1029_v2 = vld [vmem:[#allocation5 + $0x8] sm:$0xff]  }
  0x5a   :  { %898 = vmatprep.subr.bf16.mxu0 %v1223_v0  ;;  %914 = vmatprep.mubr.msk.bf16.mxu0 %vm1224_vm0, %v1223_v0  ;;  %v1030_v3 = vld [vmem:[#allocation5 + $0x10] sm:$0xff]   ;;  %v1036_v4 = vld [vmem:[#allocation7] sm:$0xff]   ;;  %v1031_v5 = vld [vmem:[#allocation5 + $0x18] sm:$0xff]  }
  0x5b   :  { %918 = vmatprep.subr.bf16.mxu1 %v1223_v0  ;;  %934 = vmatprep.mubr.msk.bf16.mxu1 %vm1224_vm0, %v1223_v0  ;;  %v1037_v6 = vld [vmem:[#allocation7 + $0x8] sm:$0xff]   ;;  %v1032_v7 = vld [vmem:[#allocation5 + $0x20] sm:$0xff]   ;;  %v1038_v8 = vld [vmem:[#allocation7 + $0x10] sm:$0xff]  }
  0x5c   :  { %899 = vmatpush3.bf16.msra.mxu0 %v1028_v1  ;;  %919 = vmatpush3.bf16.msra.mxu1 %v1036_v4  ;;  %v1033_v9 = vld [vmem:[#allocation5 + $0x28] sm:$0xff]   ;;  %v1039_v10 = vld [vmem:[#allocation7 + $0x18] sm:$0xff]   ;;  %v1034_v11 = vld [vmem:[#allocation5 + $0x30] sm:$0xff]  }
  0x5d   :  { %900 = vmatprep.subr.bf16.mxu0 %v1223_v0  ;;  %920 = vmatprep.subr.bf16.mxu1 %v1223_v0  ;;  %v1040_v12 = vld [vmem:[#allocation7 + $0x20] sm:$0xff]   ;;  %v1035_v13 = vld [vmem:[#allocation5 + $0x38] sm:$0xff]   ;;  %v1041_v14 = vld [vmem:[#allocation7 + $0x28] sm:$0xff]  }
  0x5e   :  { %v97_v15 = vld [vmem:[#allocation2] sm:$0xf]  ;;  %v1042_v16 = vld [vmem:[#allocation7 + $0x30] sm:$0xff]   ;;  %v1044_v18 = vld [vmem:[#allocation7 + $0x40] sm:$0xff]  }
  0x5f   :  { %v1043_v17 = vld [vmem:[#allocation7 + $0x38] sm:$0xff]   ;;  %v1045_v19 = vld [vmem:[#allocation7 + $0x48] sm:$0xff]   ;;  %v1046_v20 = vld [vmem:[#allocation7 + $0x50] sm:$0xff]  }
  0x60   :  { %901 = vmatpush3.bf16.msra.mxu0 %v1029_v2  ;;  %921 = vmatpush3.bf16.msra.mxu1 %v1037_v6  ;;  %v1047_v21 = vld [vmem:[#allocation7 + $0x58] sm:$0xff]   ;;  %v1048_v22 = vld [vmem:[#allocation7 + $0x60] sm:$0xff]   ;;  %v1049_v23 = vld [vmem:[#allocation7 + $0x68] sm:$0xff]  }
  0x61   :  { %902 = vmatprep.subr.bf16.mxu0 %v1223_v0  ;;  %922 = vmatprep.subr.bf16.mxu1 %v1223_v0  ;;  %v789_v24 = vld [vmem:[%s1432_s2] ss:$0 sm:$0xff]  ;;  %v1050_v32 = vld [vmem:[#allocation7 + $0x70] sm:$0xff]   ;;  %v1052_v34 = vld [vmem:[#allocation7 + $0x80] sm:$0xff]  }
  0x62   :  { %v1051_v33 = vld [vmem:[#allocation7 + $0x78] sm:$0xff]   ;;  %v1053_v35 = vld [vmem:[#allocation7 + $0x88] sm:$0xff]   ;;  %v1054_v36 = vld [vmem:[#allocation7 + $0x90] sm:$0xff]  }
  0x63   :  { %v1055_v37 = vld [vmem:[#allocation7 + $0x98] sm:$0xff]   ;;  %v1056_v38 = vld [vmem:[#allocation7 + $0xa0] sm:$0xff]   ;;  %v1057_v39 = vld [vmem:[#allocation7 + $0xa8] sm:$0xff]  }
  0x64   :  { %903 = vmatpush3.bf16.msra.mxu0 %v1030_v3  ;;  %923 = vmatpush3.bf16.msra.mxu1 %v1038_v8  ;;  %v798_v40 = vld [vmem:[%s1434_s4] ss:$0 sm:$0xff]  ;;  %v1058_v48 = vld [vmem:[#allocation7 + $0xb0] sm:$0xff]   ;;  %v1060_v50 = vld [vmem:[#allocation8] sm:$0xff]  }
  0x65   :  { %904 = vmatprep.subr.bf16.mxu0 %v1223_v0  ;;  %924 = vmatprep.subr.bf16.mxu1 %v1223_v0  ;;  %v1059_v49 = vld [vmem:[#allocation7 + $0xb8] sm:$0xff]   ;;  %v1061_v51 = vld [vmem:[#allocation8 + $0x8] sm:$0xff]   ;;  %v1062_v52 = vld [vmem:[#allocation8 + $0x10] sm:$0xff]  }
  0x66   :  { %v1063_v53 = vld [vmem:[#allocation8 + $0x18] sm:$0xff]   ;;  %v1064_v54 = vld [vmem:[#allocation8 + $0x20] sm:$0xff]   ;;  %v1065_v55 = vld [vmem:[#allocation8 + $0x28] sm:$0xff]  }
  0x67   :  { %v808_v56 = vld [vmem:[%s1434_s4 + $0x1] ss:$0 sm:$0xff]  ;;  %v1066_v1 = vld [vmem:[#allocation8 + $0x30] sm:$0xff]   ;;  %v1068_v3 = vld [vmem:[#allocation10] sm:$0xff]  }
  0x68   :  { %905 = vmatpush3.bf16.msra.mxu0 %v1031_v5  ;;  %925 = vmatpush3.bf16.msra.mxu1 %v1039_v10  ;;  %v1067_v2 = vld [vmem:[#allocation8 + $0x38] sm:$0xff]   ;;  %v1069_v4 = vld [vmem:[#allocation10 + $0x8] sm:$0xff]   ;;  %v1070_v5 = vld [vmem:[#allocation10 + $0x10] sm:$0xff]  }
  0x69   :  { %906 = vmatprep.subr.bf16.mxu0 %v1223_v0  ;;  %926 = vmatprep.subr.bf16.mxu1 %v1223_v0  ;;  %v1071_v6 = vld [vmem:[#allocation10 + $0x18] sm:$0xff]   ;;  %v1073_v8 = vld [vmem:[#allocation10 + $0x28] sm:$0xff]  }
  0x6a   :  { %v818_v10 = vld [vmem:[%s1434_s4 + $0x2] ss:$0 sm:$0xff]  ;;  %s1225_s4 = smov [#allocation11]  }
  0x6b   :  { %s778_s29 = sshll.u32 %s1225_s4, 4  ;;  %s779_s29 = int_to_ptr.vmem [resolvable:$true] %s778_s29 }
  0x6c   :  { %907 = vmatpush3.bf16.msra.mxu0 %v1032_v7  ;;  %927 = vmatpush3.bf16.msra.mxu1 %v1040_v12  ;;  %v1072_v7 = vld [vmem:[#allocation10 + $0x20] sm:$0xff]   ;;  %s1186_s30 = scalar_lea.vmem %s779_s29, 128  ;;  %p1191_p13 = scmp.lt.s32.totalorder %s779_s29, %s779_s29 }
  0x6d   :  { %908 = vmatprep.subr.bf16.mxu0 %v1223_v0  ;;  %928 = vmatprep.subr.bf16.mxu1 %v1223_v0  ;;  %p1187_p12 = scmp.ne.s32.totalorder %s779_s29, %s1186_s30  ;;  %p1192_p0 = scmp.lt.s32.totalorder %s1186_s30, %s1186_s30 }
  0x6f   :  { %p1193_p1 = por %p1192_p0, %p1191_p13 }
  0x70   :  { %909 = vmatpush3.bf16.msra.mxu0 %v1033_v9  ;;  %929 = vmatpush3.bf16.msra.mxu1 %v1041_v14  ;;  %v1074_v9 = vld [vmem:[#allocation10 + $0x30] sm:$0xff]  }
  0x71   :  { %910 = vmatprep.subr.bf16.mxu0 %v1223_v0  ;;  %930 = vmatprep.subr.bf16.mxu1 %v1223_v0  ;;  %p1194_p2 = pnand %p1193_p1, %p1187_p12 }
  0x74   :  { %911 = vmatpush3.bf16.msra.mxu0 %v1034_v11  ;;  %931 = vmatpush3.bf16.msra.mxu1 %v1042_v16 }
  0x75   :  { %912 = vmatprep.subr.bf16.mxu0 %v1223_v0  ;;  %932 = vmatprep.subr.bf16.mxu1 %v1223_v0 }
  0x78   :  { %913 = vmatpush3.bf16.msra.mxu0 %v1035_v13  ;;  %933 = vmatpush3.bf16.msra.mxu1 %v1043_v17 }
  0x79   :  { %938 = vmatprep.subr.bf16.mxu0 %v1223_v0  ;;  %958 = vmatprep.subr.bf16.mxu1 %v1223_v0 }
  0x7b   :  { %915 = vmatmul.mubr.bf16.vlgmr.msra.gmra.mrb[0].mxu0 %v97_v15 }
  0x7c   :  { %954 = vmatprep.mubr.msk.bf16.mxu0 %vm1224_vm0, %v1223_v0  ;;  %939 = vmatpush3.bf16.msra.mxu0 %v1044_v18  ;;  %v1075_v18 = vld [vmem:[#allocation10 + $0x38] sm:$0xff]  }
  0x7d   :  { %940 = vmatprep.subr.bf16.mxu0 %v1223_v0 }
  0x80   :  { %941 = vmatpush3.bf16.msra.mxu0 %v1045_v19 }
  0x81   :  { %942 = vmatprep.subr.bf16.mxu0 %v1223_v0 }
  0x84   :  { %943 = vmatpush3.bf16.msra.mxu0 %v1046_v20 }
  0x85   :  { %944 = vmatprep.subr.bf16.mxu0 %v1223_v0 }
  0x88   :  { %945 = vmatpush3.bf16.msra.mxu0 %v1047_v21 }
  0x89   :  { %946 = vmatprep.subr.bf16.mxu0 %v1223_v0 }
  0x8c   :  { %947 = vmatpush3.bf16.msra.mxu0 %v1048_v22 }
  0x8d   :  { %948 = vmatprep.subr.bf16.mxu0 %v1223_v0 }
  0x90   :  { %949 = vmatpush3.bf16.msra.mxu0 %v1049_v23 }
  0x91   :  { %950 = vmatprep.subr.bf16.mxu0 %v1223_v0 }
  0x94   :  { %951 = vmatpush3.bf16.msra.mxu0 %v1050_v32 }
  0x95   :  { %952 = vmatprep.subr.bf16.mxu0 %v1223_v0 }
  0x98   :  { %953 = vmatpush3.bf16.msra.mxu0 %v1051_v33 }
  0x99   :  { %978 = vmatprep.subr.bf16.mxu0 %v1223_v0 }
 0x14e   :  { %v203_v25 = vpop.f32.mrb[0].mxu0 }
 0x14f   :  { %v204_v26 = vadd.f32 %v789_v24, %v203_v25  ;;  %v916_v27 = vpop.f32.mrb[1].mxu0  ;;  %v835_v24 = vld [vmem:[%s1437_s7] ss:$0 sm:$0xff] }
 0x150   :  { %v206_v28 = vpop.f32.mrb[2].mxu0 }
 0x151   :  { %v209_v29 = vmax.f32 %v204_v26, 0.0  ;;  %v917_v30 = vpop.f32.mrb[3].mxu0 }
 0x153   :  { %v210_v31 = vpack.c.bf16 %v209_v29, %v209_v29 }
 0x155   :  { %935 = vmatmul.mubr.bf16.vlgmr.msra.gmra.mrb[0].mxu1 %v210_v31 }
 0x156   :  { %974 = vmatprep.mubr.msk.bf16.mxu1 %vm1224_vm0, %v1223_v0  ;;  %959 = vmatpush3.bf16.msra.mxu1 %v1052_v34 }
 0x157   :  { %960 = vmatprep.subr.bf16.mxu1 %v1223_v0 }
 0x15a   :  { %961 = vmatpush3.bf16.msra.mxu1 %v1053_v35 }
 0x15b   :  { %962 = vmatprep.subr.bf16.mxu1 %v1223_v0 }
 0x15e   :  { %963 = vmatpush3.bf16.msra.mxu1 %v1054_v36 }
 0x15f   :  { %964 = vmatprep.subr.bf16.mxu1 %v1223_v0 }
 0x162   :  { %965 = vmatpush3.bf16.msra.mxu1 %v1055_v37 }
 0x163   :  { %966 = vmatprep.subr.bf16.mxu1 %v1223_v0 }
 0x166   :  { %967 = vmatpush3.bf16.msra.mxu1 %v1056_v38 }
 0x167   :  { %968 = vmatprep.subr.bf16.mxu1 %v1223_v0 }
 0x16a   :  { %969 = vmatpush3.bf16.msra.mxu1 %v1057_v39 }
 0x16b   :  { %970 = vmatprep.subr.bf16.mxu1 %v1223_v0 }
 0x16e   :  { %971 = vmatpush3.bf16.msra.mxu1 %v1058_v48 }
 0x16f   :  { %972 = vmatprep.subr.bf16.mxu1 %v1223_v0 }
 0x172   :  { %973 = vmatpush3.bf16.msra.mxu1 %v1059_v49 }
 0x173   :  { %998 = vmatprep.subr.bf16.mxu1 %v1223_v0 }
 0x228   :  { %v316_v41 = vpop.f32.mrb[0].mxu1 }
 0x229   :  { %v317_v42 = vadd.f32 %v798_v40, %v316_v41  ;;  %v936_v43 = vpop.f32.mrb[1].mxu1 }
 0x22a   :  { %v319_v44 = vpop.f32.mrb[2].mxu1 }
 0x22b   :  { %v322_v45 = vmax.f32 %v317_v42, 0.0  ;;  %v937_v46 = vpop.f32.mrb[3].mxu1 }
 0x22d   :  { %v323_v47 = vpack.c.bf16 %v322_v45, %v322_v45 }
 0x22f   :  { %955 = vmatmul.mubr.bf16.vlgmr.msra.gmra.mrb[4].mxu0 %v323_v47 }
 0x230   :  { %994 = vmatprep.mubr.msk.bf16.mxu0 %vm1224_vm0, %v1223_v0  ;;  %979 = vmatpush3.bf16.msra.mxu0 %v1060_v50 }
 0x231   :  { %980 = vmatprep.subr.bf16.mxu0 %v1223_v0 }
 0x234   :  { %981 = vmatpush3.bf16.msra.mxu0 %v1061_v51 }
 0x235   :  { %982 = vmatprep.subr.bf16.mxu0 %v1223_v0 }
 0x238   :  { %983 = vmatpush3.bf16.msra.mxu0 %v1062_v52 }
 0x239   :  { %984 = vmatprep.subr.bf16.mxu0 %v1223_v0 }
 0x23c   :  { %985 = vmatpush3.bf16.msra.mxu0 %v1063_v53 }
 0x23d   :  { %986 = vmatprep.subr.bf16.mxu0 %v1223_v0 }
 0x240   :  { %987 = vmatpush3.bf16.msra.mxu0 %v1064_v54 }
 0x241   :  { %988 = vmatprep.subr.bf16.mxu0 %v1223_v0 }
 0x244   :  { %989 = vmatpush3.bf16.msra.mxu0 %v1065_v55 }
 0x245   :  { %990 = vmatprep.subr.bf16.mxu0 %v1223_v0 }
 0x248   :  { %991 = vmatpush3.bf16.msra.mxu0 %v1066_v1 }
 0x249   :  { %992 = vmatprep.subr.bf16.mxu0 %v1223_v0 }
 0x24c   :  { %993 = vmatpush3.bf16.msra.mxu0 %v1067_v2 }
 0x302   :  { %v431_v57 = vpop.f32.mrb[4].mxu0 }
 0x303   :  { %v432_v58 = vadd.f32 %v808_v56, %v431_v57  ;;  %v956_v59 = vpop.f32.mrb[5].mxu0 }
 0x304   :  { %v434_v60 = vpop.f32.mrb[6].mxu0 }
 0x305   :  { %v437_v61 = vmax.f32 %v432_v58, 0.0  ;;  %v957_v62 = vpop.f32.mrb[7].mxu0 }
 0x307   :  { %v438_v63 = vpack.c.bf16 %v437_v61, %v437_v61 }
 0x309   :  { %975 = vmatmul.mubr.bf16.vlgmr.msra.gmra.mrb[4].mxu1 %v438_v63 }
 0x30a   :  { %1014 = vmatprep.mubr.msk.bf16.mxu1 %vm1224_vm0, %v1223_v0  ;;  %999 = vmatpush3.bf16.msra.mxu1 %v1068_v3 }
 0x30b   :  { %1000 = vmatprep.subr.bf16.mxu1 %v1223_v0 }
 0x30e   :  { %1001 = vmatpush3.bf16.msra.mxu1 %v1069_v4 }
 0x30f   :  { %1002 = vmatprep.subr.bf16.mxu1 %v1223_v0 }
 0x312   :  { %1003 = vmatpush3.bf16.msra.mxu1 %v1070_v5 }
 0x313   :  { %1004 = vmatprep.subr.bf16.mxu1 %v1223_v0 }
 0x316   :  { %1005 = vmatpush3.bf16.msra.mxu1 %v1071_v6 }
 0x317   :  { %1006 = vmatprep.subr.bf16.mxu1 %v1223_v0 }
 0x31a   :  { %1007 = vmatpush3.bf16.msra.mxu1 %v1072_v7 }
 0x31b   :  { %1008 = vmatprep.subr.bf16.mxu1 %v1223_v0 }
 0x31e   :  { %1009 = vmatpush3.bf16.msra.mxu1 %v1073_v8 }
 0x31f   :  { %1010 = vmatprep.subr.bf16.mxu1 %v1223_v0 }
 0x322   :  { %1011 = vmatpush3.bf16.msra.mxu1 %v1074_v9 }
 0x323   :  { %1012 = vmatprep.subr.bf16.mxu1 %v1223_v0 }
 0x326   :  { %1013 = vmatpush3.bf16.msra.mxu1 %v1075_v18 }
 0x3dc   :  { %v546_v11 = vpop.f32.mrb[4].mxu1 }
 0x3dd   :  { %v547_v12 = vadd.f32 %v818_v10, %v546_v11  ;;  %v976_v13 = vpop.f32.mrb[5].mxu1 }
 0x3de   :  { %v549_v14 = vpop.f32.mrb[6].mxu1 }
 0x3df   :  { %v552_v15 = vmax.f32 %v547_v12, 0.0  ;;  %v977_v16 = vpop.f32.mrb[7].mxu1 }
 0x3e1   :  { %v553_v17 = vpack.c.bf16 %v552_v15, %v552_v15 }
 0x3e3   :  { %995 = vmatmul.mubr.bf16.vlgmr.msra.gmra.mrb[8].mxu0 %v553_v17 }
 0x4b6   :  { %v652_v19 = vpop.f32.mrb[8].mxu0 }
 0x4b7   :  { %v658_v20 = vmax.f32 %v652_v19, 0.0  ;;  %v996_v21 = vpop.f32.mrb[9].mxu0 }
 0x4b8   :  { %v655_v22 = vpop.f32.mrb[10].mxu0 }
 0x4b9   :  { %v659_v23 = vpack.c.bf16 %v658_v20, %v658_v20  ;;  %v997_v0 = vpop.f32.mrb[11].mxu0 }
 0x4bb   :  { %1015 = vmatmul.mubr.bf16.vlgmr.msra.gmra.mrb[8].mxu1 %v659_v23 }
 0x58e   :  { %v765_v25 = vpop.f32.mrb[8].mxu1 }
 0x58f   :  { %v766_v26 = vadd.f32 %v835_v24, %v765_v25  ;;  %v1016_v27 = vpop.f32.mrb[9].mxu1 }
 0x590   :  { %v768_v28 = vpop.f32.mrb[10].mxu1 }
 0x591   :  { %771 = vst [vmem:[#allocation11] sm:$0xff] %v766_v26  ;;  %v1017_v29 = vpop.f32.mrb[11].mxu1 }
 0x592   :  { %1197 = shalt.err (!%p1194_p2)
}
 0x593   :  { %s1198_s7 = scalar_lea.hbm %s1438_s8, 128 }
 0x594   :  { %p1199_p3 = scmp.ne.s32.totalorder %s1438_s8, %s1198_s7  ;;  %p1202_p4 = scmp.lt.u32.totalorder %s1198_s7, %s1438_s8 }
 0x596   :  { %p1204_p5 = pnand %p1202_p4, %p1199_p3 }
 0x598   :  { %1207 = shalt.err (!%p1204_p5)
}
 0x599   :  { %781 = dma.vmem_to_hbm [thread:$0]  %s779_s29, 128, %s1438_s8, [#allocation4]  }
 0x59a   :  { %1214 = dma.done.wait [#allocation4], 128  }
 0x59b   :  { %1215 = vsyncadd [#allocation4], 4294967168 }
 0x59c   :  { %785 = vsyncpa [#allocation3], 1 }
 0x59d   :  { %786 = vsyncpa [#allocation6], 1 }
 0x59e   :  { %787 = vsyncpa [#allocation9], 1 }
 0x59f   :  { %788 = vsyncpa [#allocation4], 1 }

</bundles_post_ra>
